<compile_context>
chip_gen: v7x
topology: tpu7x:2x2x1
jax: 0.10.0
libtpu: 0.0.40
codegen_flags: <defaults>
</compile_context>

<pallas_src>
import jax
import jax.numpy as jnp
from jax import lax
from jax.experimental import pallas as pl
from jax.experimental.pallas import tpu as pltpu

_SQRT_2_OVER_PI = 0.7978845608028654
_GELU_COEFF = 0.044715


def _round_up(v, m):
    return (v + m - 1) // m * m


def _gelu_tanh(x):
    # tanh-approx GELU: tanh goes to the EUP (its own VLIW slot) instead of the VALU.
    # ~1e-3 deviation from torch's default exact-erf GELU.
    x3 = x * x * x
    return 0.5 * x * (1.0 + jnp.tanh(_SQRT_2_OVER_PI * (x + _GELU_COEFF * x3)))


def _gelu_exact(x):
    # torch.nn.functional.gelu default: 0.5 * x * (1 + erf(x / sqrt(2)))
    return 0.5 * x * (1.0 + lax.erf(x * jnp.float32(0.7071067811865476)))


def _make_mlp_kernel(n_layers, compute_dtype):
    """Kernel refs: (x_ref, w0, b0, w1, b1, ..., w_{n-1}, b_{n-1}, o_ref)."""

    def kernel(*refs):
        x_ref = refs[0]
        o_ref = refs[-1]
        wb_refs = refs[1:-1]

        h = x_ref[...]
        for i in range(n_layers):
            w = wb_refs[2 * i][...]          # compute_dtype (bf16 by default)
            b = wb_refs[2 * i + 1][...]      # f32
            h = jnp.dot(h.astype(compute_dtype), w,
                        preferred_element_type=jnp.float32) + b
            if i < n_layers - 1:             # GELU on all but the last layer (f32 math)
                h = _gelu_tanh(h)
        o_ref[...] = h.astype(o_ref.dtype)

    return kernel


def init_params(key, latent_dim, output_dim, hid_layers=2, hid_dim=64):
    """Deterministic init mimicking torch.nn.Linear (uniform +/- 1/sqrt(fan_in))."""
    dims = [latent_dim] + [hid_dim] * hid_layers + [output_dim]
    params = []
    for i in range(len(dims) - 1):
        key, kw, kb = jax.random.split(key, 3)
        fan_in = dims[i]
        bound = 1.0 / float(fan_in) ** 0.5
        w = jax.random.uniform(kw, (dims[i], dims[i + 1]), jnp.float32, -bound, bound)
        b = jax.random.uniform(kb, (1, dims[i + 1]), jnp.float32, -bound, bound)
        params.append((w, b))
    return params


def net_forward(x, params, *, batch_tile=2048, compute_dtype=jnp.bfloat16):
    """Forward pass of Net. Accepts (B, latent_dim) or unbatched (latent_dim,)."""
    is_batched = x.ndim > 1
    if not is_batched:
        x = x[None, :]

    B, d_in = x.shape
    n_layers = len(params)
    d_out = params[-1][0].shape[1]

    # Feature dims: input / output stay at their true widths (block last dim == array dim,
    # so loads/stores need no HBM-side padding).  Hidden dims — which only ever live in
    # VMEM/vregs — are padded to full 128-lane width.
    dims = [d_in] + [w.shape[1] for (w, _) in params]
    pdims = [dims[0]] + [_round_up(d, 128) for d in dims[1:-1]] + [dims[-1]]
    # TODO(synk): if hid_dim ever grows past 128, round hidden dims to 256 on v6e/v7x
    # (2x256^2 MXU) and keep 128 on v5e; irrelevant while this MLP is memory-bound.

    # Batch tiling: big tiles (default 2048) to amortize the ~0.35us per-grid-step cost,
    # balanced across steps so row padding is at most a few rows (often zero).
    n_tiles = max(1, -(-B // batch_tile))
    tb = _round_up(-(-B // n_tiles), 8)
    b_pad = n_tiles * tb
    grid = (n_tiles,)

    x_in = x if b_pad == B else jnp.pad(x, ((0, b_pad - B), (0, 0)))

    flat_args = [x_in]
    in_specs = [pl.BlockSpec((tb, dims[0]), lambda i: (i, 0))]
    for li, (w, b) in enumerate(params):
        pin, pout = pdims[li], pdims[li + 1]
        w_p = jnp.pad(w, ((0, pin - w.shape[0]), (0, pout - w.shape[1]))).astype(compute_dtype)
        b_p = jnp.pad(b, ((0, 0), (0, pout - b.shape[1]))).astype(jnp.float32)
        flat_args.append(w_p)
        flat_args.append(b_p)
        # Full (padded) weight/bias resident in VMEM; constant block index -> no re-DMA.
        in_specs.append(pl.BlockSpec((pin, pout), lambda i: (0, 0)))
        in_specs.append(pl.BlockSpec((1, pout), lambda i: (0, 0)))

    out_dtype = x.dtype
    out_spec = pl.BlockSpec((tb, dims[-1]), lambda i: (i, 0))

    # Cost estimate for XLA scheduling around the custom call.
    flops = 2 * b_pad * sum(pdims[i] * pdims[i + 1] for i in range(n_layers))
    transcendentals = b_pad * sum(pdims[1:-1])
    wb_bytes = sum(int(a.size) * a.dtype.itemsize for a in flat_args[1:])
    bytes_accessed = int(
        x_in.size * x_in.dtype.itemsize
        + b_pad * dims[-1] * jnp.dtype(out_dtype).itemsize
        + wb_bytes
    )

    # Explicit scoped-VMEM budget: >= what the tiles need (with headroom), floored at
    # 32 MiB (raises v5e's 16 MiB default) and capped at 48 MiB (fits v7x's 64 MiB physical).
    io_tile_bytes = tb * dims[0] * x_in.dtype.itemsize + tb * dims[-1] * jnp.dtype(out_dtype).itemsize
    act_bytes = 3 * tb * max(pdims) * 4
    vmem_needed = 2 * io_tile_bytes + 2 * wb_bytes + act_bytes
    vmem_limit = int(min(max(2 * vmem_needed, 32 << 20), 48 << 20))

    out = pl.pallas_call(
        _make_mlp_kernel(n_layers, compute_dtype),
        out_shape=jax.ShapeDtypeStruct((b_pad, dims[-1]), out_dtype),
        grid_spec=pltpu.PrefetchScalarGridSpec(
            num_scalar_prefetch=0,
            grid=grid,
            in_specs=in_specs,
            out_specs=out_spec,
        ),
        compiler_params=pltpu.CompilerParams(
            dimension_semantics=("parallel",),   # megacore split of batch tiles on v7x
            vmem_limit_bytes=vmem_limit,
        ),
        cost_estimate=pl.CostEstimate(
            flops=flops,
            transcendentals=transcendentals,
            bytes_accessed=bytes_accessed,
        ),
    )(*flat_args)

    if b_pad != B:
        out = out[:B]          # drop padded rows (columns are never padded anymore)
    if not is_batched:
        out = out[0]
    return out


def _reference_forward(x, params, compute_dtype=jnp.bfloat16):
    """Pure-JAX mirror of the kernel math (bf16 operands, f32 accum, tanh GELU)."""
    is_batched = x.ndim > 1
    if not is_batched:
        x = x[None, :]
    h = x
    for i, (w, b) in enumerate(params):
        h = jnp.dot(h.astype(compute_dtype), w.astype(compute_dtype),
                    preferred_element_type=jnp.float32) + b
        if i < len(params) - 1:
            h = _gelu_tanh(h)
    if not is_batched:
        h = h[0]
    return h


def _reference_forward_exact(x, params):
    """f32 exact-erf GELU reference (matches torch defaults)."""
    is_batched = x.ndim > 1
    if not is_batched:
        x = x[None, :]
    h = x.astype(jnp.float32)
    for i, (w, b) in enumerate(params):
        h = h @ w + b
        if i < len(params) - 1:
            h = _gelu_exact(h)
    if not is_batched:
        h = h[0]
    return h


if __name__ == "__main__":
    latent_dim, output_dim, hid_layers, hid_dim = 16, 8, 2, 64
    batch = 8

    key = jax.random.PRNGKey(0)
    key, kx = jax.random.split(key)
    params = init_params(key, latent_dim, output_dim, hid_layers, hid_dim)
    x = jax.random.normal(kx, (batch, latent_dim), jnp.float32)

    out = jax.block_until_ready(net_forward(x, params))
    assert out.shape == (batch, output_dim)

    ref = _reference_forward(x, params)
    assert jnp.allclose(out, ref, atol=2e-3, rtol=2e-3), "kernel mismatch vs mirrored reference"

    # loose check vs torch-default (f32, exact-erf GELU) semantics: bf16 + tanh-GELU
    # introduce only ~1e-3-level deviations at these scales.
    ref_exact = _reference_forward_exact(x, params)
    assert jnp.allclose(out, ref_exact, atol=5e-2, rtol=5e-2), "kernel drifted from exact reference"

    # non-divisible batch + multi-step parallel grid (exercises row-padding/tiling path)
    x2 = jax.random.normal(jax.random.PRNGKey(1), (300, latent_dim), jnp.float32)
    out2 = jax.block_until_ready(net_forward(x2, params, batch_tile=128))
    ref2 = _reference_forward(x2, params)
    assert out2.shape == (300, output_dim)
    assert jnp.allclose(out2, ref2, atol=2e-3, rtol=2e-3), "kernel mismatch on padded batch"

    # bf16 input path (halved input HBM stream; caller supplies bf16 directly)
    xb = x.astype(jnp.bfloat16)
    outb = jax.block_until_ready(net_forward(xb, params))
    refb = _reference_forward(xb, params).astype(jnp.bfloat16)
    assert outb.dtype == jnp.bfloat16
    assert jnp.allclose(outb.astype(jnp.float32), refb.astype(jnp.float32),
                        atol=2e-2, rtol=2e-2), "kernel mismatch on bf16 input"

    # unbatched path (forward handles 1-D inputs like the torch module)
    out1 = jax.block_until_ready(net_forward(x[0], params))
    assert out1.shape == (output_dim,)

    print("KERNEL_OK")
</pallas_src>

<mosaic_0001>
module attributes {stable_mosaic.version = 11 : i64} {
  func.func @kernel(%arg0: i32, %arg1: memref<8x16xf32, #tpu.memory_space<vmem>>, %arg2: memref<16x128xbf16, #tpu.memory_space<vmem>>, %arg3: memref<1x128xf32, #tpu.memory_space<vmem>>, %arg4: memref<128x128xbf16, #tpu.memory_space<vmem>>, %arg5: memref<1x128xf32, #tpu.memory_space<vmem>>, %arg6: memref<128x8xbf16, #tpu.memory_space<vmem>>, %arg7: memref<1x8xf32, #tpu.memory_space<vmem>>, %arg8: memref<8x8xf32, #tpu.memory_space<vmem>>) attributes {dimension_semantics = [#tpu.dimension_semantics<parallel>], iteration_bounds = array<i64: 1>, scalar_prefetch = 0 : i64, scratch_operands = 0 : i64, tpu.core_type = #tpu.core_type<tc>, window_params = [{transform_indices = @transform_0, window_bounds = array<i64: 8, 16>}, {pipeline_mode = #tpu.pipeline_mode<synchronous>, transform_indices = @transform_1, window_bounds = array<i64: 16, 128>}, {pipeline_mode = #tpu.pipeline_mode<synchronous>, transform_indices = @transform_2, window_bounds = array<i64: 1, 128>}, {pipeline_mode = #tpu.pipeline_mode<synchronous>, transform_indices = @transform_3, window_bounds = array<i64: 128, 128>}, {pipeline_mode = #tpu.pipeline_mode<synchronous>, transform_indices = @transform_4, window_bounds = array<i64: 1, 128>}, {pipeline_mode = #tpu.pipeline_mode<synchronous>, transform_indices = @transform_5, window_bounds = array<i64: 128, 8>}, {pipeline_mode = #tpu.pipeline_mode<synchronous>, transform_indices = @transform_6, window_bounds = array<i64: 1, 8>}, {transform_indices = @transform_7, window_bounds = array<i64: 8, 8>}]} {
    %c0 = arith.constant 0 : index
    %c0_0 = arith.constant 0 : index
    %0 = vector.load %arg1[%c0, %c0_0] : memref<8x16xf32, #tpu.memory_space<vmem>>, vector<8x16xf32>
    %c0_1 = arith.constant 0 : index
    %c0_2 = arith.constant 0 : index
    %1 = vector.load %arg2[%c0_1, %c0_2] : memref<16x128xbf16, #tpu.memory_space<vmem>>, vector<16x128xbf16>
    %c0_3 = arith.constant 0 : index
    %c0_4 = arith.constant 0 : index
    %2 = vector.load %arg3[%c0_3, %c0_4] : memref<1x128xf32, #tpu.memory_space<vmem>>, vector<1x128xf32>
    %3 = arith.truncf %0 : vector<8x16xf32> to vector<8x16xbf16>
    %cst = arith.constant dense<0.000000e+00> : vector<8x128xf32>
    %4 = tpu.matmul %3, %1, %cst {dimension_numbers = #tpu.dot_dimension_numbers<[1], [0], [0], [1], [0, 0, 1, 1], [], []>} : vector<8x16xbf16>, vector<16x128xbf16>, vector<8x128xf32> -> vector<8x128xf32>
    %5 = vector.broadcast %2 : vector<1x128xf32> to vector<8x128xf32>
    %6 = arith.addf %4, %5 : vector<8x128xf32>
    %7 = arith.mulf %6, %6 : vector<8x128xf32>
    %8 = arith.mulf %7, %6 : vector<8x128xf32>
    %cst_5 = arith.constant 5.000000e-01 : f32
    %9 = vector.broadcast %cst_5 : f32 to vector<8x128xf32>
    %10 = arith.mulf %9, %6 : vector<8x128xf32>
    %cst_6 = arith.constant 4.471500e-02 : f32
    %11 = vector.broadcast %cst_6 : f32 to vector<8x128xf32>
    %12 = arith.mulf %11, %8 : vector<8x128xf32>
    %13 = arith.addf %6, %12 : vector<8x128xf32>
    %cst_7 = arith.constant 0.797884583 : f32
    %14 = vector.broadcast %cst_7 : f32 to vector<8x128xf32>
    %15 = arith.mulf %14, %13 : vector<8x128xf32>
    %16 = math.tanh %15 : vector<8x128xf32>
    %cst_8 = arith.constant 1.000000e+00 : f32
    %17 = vector.broadcast %cst_8 : f32 to vector<8x128xf32>
    %18 = arith.addf %17, %16 : vector<8x128xf32>
    %19 = arith.mulf %10, %18 : vector<8x128xf32>
    %c0_9 = arith.constant 0 : index
    %c0_10 = arith.constant 0 : index
    %20 = vector.load %arg4[%c0_9, %c0_10] : memref<128x128xbf16, #tpu.memory_space<vmem>>, vector<128x128xbf16>
    %c0_11 = arith.constant 0 : index
    %c0_12 = arith.constant 0 : index
    %21 = vector.load %arg5[%c0_11, %c0_12] : memref<1x128xf32, #tpu.memory_space<vmem>>, vector<1x128xf32>
    %22 = arith.truncf %19 : vector<8x128xf32> to vector<8x128xbf16>
    %cst_13 = arith.constant dense<0.000000e+00> : vector<8x128xf32>
    %23 = tpu.matmul %22, %20, %cst_13 {dimension_numbers = #tpu.dot_dimension_numbers<[1], [0], [0], [1], [0, 0, 1, 1], [], []>} : vector<8x128xbf16>, vector<128x128xbf16>, vector<8x128xf32> -> vector<8x128xf32>
    %24 = vector.broadcast %21 : vector<1x128xf32> to vector<8x128xf32>
    %25 = arith.addf %23, %24 : vector<8x128xf32>
    %26 = arith.mulf %25, %25 : vector<8x128xf32>
    %27 = arith.mulf %26, %25 : vector<8x128xf32>
    %cst_14 = arith.constant 5.000000e-01 : f32
    %28 = vector.broadcast %cst_14 : f32 to vector<8x128xf32>
    %29 = arith.mulf %28, %25 : vector<8x128xf32>
    %cst_15 = arith.constant 4.471500e-02 : f32
    %30 = vector.broadcast %cst_15 : f32 to vector<8x128xf32>
    %31 = arith.mulf %30, %27 : vector<8x128xf32>
    %32 = arith.addf %25, %31 : vector<8x128xf32>
    %cst_16 = arith.constant 0.797884583 : f32
    %33 = vector.broadcast %cst_16 : f32 to vector<8x128xf32>
    %34 = arith.mulf %33, %32 : vector<8x128xf32>
    %35 = math.tanh %34 : vector<8x128xf32>
    %cst_17 = arith.constant 1.000000e+00 : f32
    %36 = vector.broadcast %cst_17 : f32 to vector<8x128xf32>
    %37 = arith.addf %36, %35 : vector<8x128xf32>
    %38 = arith.mulf %29, %37 : vector<8x128xf32>
    %c0_18 = arith.constant 0 : index
    %c0_19 = arith.constant 0 : index
    %39 = vector.load %arg6[%c0_18, %c0_19] : memref<128x8xbf16, #tpu.memory_space<vmem>>, vector<128x8xbf16>
    %c0_20 = arith.constant 0 : index
    %c0_21 = arith.constant 0 : index
    %40 = vector.load %arg7[%c0_20, %c0_21] : memref<1x8xf32, #tpu.memory_space<vmem>>, vector<1x8xf32>
    %41 = arith.truncf %38 : vector<8x128xf32> to vector<8x128xbf16>
    %cst_22 = arith.constant dense<0.000000e+00> : vector<8x8xf32>
    %42 = tpu.matmul %41, %39, %cst_22 {dimension_numbers = #tpu.dot_dimension_numbers<[1], [0], [0], [1], [0, 0, 1, 1], [], []>} : vector<8x128xbf16>, vector<128x8xbf16>, vector<8x8xf32> -> vector<8x8xf32>
    %43 = vector.broadcast %40 : vector<1x8xf32> to vector<8x8xf32>
    %44 = arith.addf %42, %43 : vector<8x8xf32>
    %c0_23 = arith.constant 0 : index
    %c0_24 = arith.constant 0 : index
    %45 = vector.load %arg8[%c0_23, %c0_24] : memref<8x8xf32, #tpu.memory_space<vmem>>, vector<8x8xf32>
    tpu.vector_store %arg8[%c0_23, %c0_24], %44 {strides = array<i32>} : memref<8x8xf32, #tpu.memory_space<vmem>>, vector<8x8xf32>,
    return
  }
  func.func @transform_0(%arg0: i32) -> (i32, i32) {
    %c0_i32 = arith.constant 0 : i32
    %c0_i32_0 = arith.constant 0 : i32
    return %arg0, %c0_i32 : i32, i32
  }
  func.func @transform_1(%arg0: i32) -> (i32, i32) {
    %c0_i32 = arith.constant 0 : i32
    %c0_i32_0 = arith.constant 0 : i32
    %c0_i32_1 = arith.constant 0 : i32
    return %c0_i32, %c0_i32_0 : i32, i32
  }
  func.func @transform_2(%arg0: i32) -> (i32, i32) {
    %c0_i32 = arith.constant 0 : i32
    %c0_i32_0 = arith.constant 0 : i32
    %c0_i32_1 = arith.constant 0 : i32
    return %c0_i32, %c0_i32_0 : i32, i32
  }
  func.func @transform_3(%arg0: i32) -> (i32, i32) {
    %c0_i32 = arith.constant 0 : i32
    %c0_i32_0 = arith.constant 0 : i32
    %c0_i32_1 = arith.constant 0 : i32
    return %c0_i32, %c0_i32_0 : i32, i32
  }
  func.func @transform_4(%arg0: i32) -> (i32, i32) {
    %c0_i32 = arith.constant 0 : i32
    %c0_i32_0 = arith.constant 0 : i32
    %c0_i32_1 = arith.constant 0 : i32
    return %c0_i32, %c0_i32_0 : i32, i32
  }
  func.func @transform_5(%arg0: i32) -> (i32, i32) {
    %c0_i32 = arith.constant 0 : i32
    %c0_i32_0 = arith.constant 0 : i32
    %c0_i32_1 = arith.constant 0 : i32
    return %c0_i32, %c0_i32_0 : i32, i32
  }
  func.func @transform_6(%arg0: i32) -> (i32, i32) {
    %c0_i32 = arith.constant 0 : i32
    %c0_i32_0 = arith.constant 0 : i32
    %c0_i32_1 = arith.constant 0 : i32
    return %c0_i32, %c0_i32_0 : i32, i32
  }
  func.func @transform_7(%arg0: i32) -> (i32, i32) {
    %c0_i32 = arith.constant 0 : i32
    %c0_i32_0 = arith.constant 0 : i32
    return %arg0, %c0_i32 : i32, i32
  }
}

</mosaic_0001>

<bundles_post_ra>
// kernel: tpu_custom_call.1
= control target key start
LH: loop header
LB: loop body
LE: loop exit
PB: predicated region body
PF: predicated region fallthrough
CT: control target
= control target key end

     0   :  { %12 = vsyncpa [#allocation3], 0  ;;  %s674_s0 = inlined_call_operand.vmem [shape: f32[8,16], index: 0, kind: input, shape index: {}]   ;;  %s675_s1 = inlined_call_operand.hbm [shape: bf16[16,128], index: 1, kind: input, shape index: {}]   ;;  %s676_s2 = inlined_call_operand.vmem [shape: f32[1,128], index: 2, kind: input, shape index: {}]   ;;  %s677_s3 = inlined_call_operand.vmem [shape: bf16[128,128], index: 3, kind: input, shape index: {}]   ;;  %s678_s4 = inlined_call_operand.vmem [shape: f32[1,128], index: 4, kind: input, shape index: {}]   ;;  %s679_s5 = inlined_call_operand.vmem [shape: bf16[128,8], index: 5, kind: input, shape index: {}]   ;;  %s680_s6 = inlined_call_operand.vmem [shape: f32[1,8], index: 6, kind: input, shape index: {}]   ;;  %s681_s7 = inlined_call_operand.hbm [shape: f32[8,8], index: 7, kind: output, shape index: {}]  }
   0x1   :  { %13 = vsyncpa [#allocation4], 0  ;;  %s524_s24 = smov [#allocation2]   ;;  %s476_s28 = scalar_lea.hbm %s675_s1, 128 }
   0x2   :  { %s21_s25 = sshll.u32 %s524_s24, 4  ;;  %p477_p0 = scmp.ne.s32.totalorder %s675_s1, %s476_s28  ;;  %s22_s25 = int_to_ptr.vmem [resolvable:$true] %s21_s25 }
   0x3   :  { %p480_p1 = scmp.lt.u32.totalorder %s476_s28, %s675_s1 }
   0x5   :  { %p482_p2 = pnand %p480_p1, %p477_p0 }
   0x7   :  { %485 = shalt.err (!%p482_p2)
}
   0x8   :  { %s486_s10 = scalar_lea.vmem %s22_s25, 128  ;;  %p491_p4 = scmp.lt.s32.totalorder %s22_s25, %s22_s25 }
   0x9   :  { %p487_p3 = scmp.ne.s32.totalorder %s22_s25, %s486_s10  ;;  %p492_p5 = scmp.lt.s32.totalorder %s486_s10, %s486_s10 }
   0xb   :  { %p493_p6 = por %p492_p5, %p491_p4 }
   0xd   :  { %p494_p7 = pnand %p493_p6, %p487_p3 }
   0xf   :  { %497 = shalt.err (!%p494_p7)
}
  0x10   :  { %s525_s11 = smov 64   ;;  %s526_s12 = smov 4  }
  0x11   :  { %27 = dma.hbm_to_vmem [thread:$0]  %s675_s1, 128, %s22_s25, [#allocation3], %s525_s11, %s525_s11, %s526_s12  }
  0x12   :  { %520 = dma.done.wait [#allocation3], 128  }
  0x13   :  { %521 = vsyncadd [#allocation3], 4294967168  ;;  %v527_v0 = vmov 0.0   ;;  %vm528_vm0 = vmmov 0   ;;  %v455_v1 = vld [vmem:[#allocation2] sm:$0xff]   ;;  %vm59_vm1 = vcmask 130048  }
  0x14   :  { %403 = vmatprep.subr.bf16.mxu0 %v527_v0  ;;  %405 = vmatprep.mubr.msk.bf16.mxu0 %vm528_vm0, %v527_v0  ;;  %v42_v2 = vld [vmem:[%s674_s0] sm:$0xff]  ;;  %v457_v5 = vld [vmem:[%s677_s3 + $0x8] sm:$0xff]   ;;  %v458_v6 = vld [vmem:[%s677_s3 + $0x10] sm:$0xff]   ;;  %vm345_vm2 = vcmask 64512  }
  0x15   :  { %409 = vmatprep.subr.bf16.mxu1 %v527_v0  ;;  %425 = vmatprep.mubr.msk.bf16.mxu1 %vm528_vm0, %v527_v0  ;;  %v46_v3 = vpack.c.bf16 %v42_v2, %v42_v2  ;;  %v456_v4 = vld [vmem:[%s677_s3] sm:$0xff]   ;;  %v459_v7 = vld [vmem:[%s677_s3 + $0x18] sm:$0xff]   ;;  %v461_v9 = vld [vmem:[%s677_s3 + $0x28] sm:$0xff]  }
  0x16   :  { %404 = vmatpush3.bf16.msra.mxu0 %v455_v1  ;;  %410 = vmatpush3.bf16.msra.mxu1 %v456_v4  ;;  %v460_v8 = vld [vmem:[%s677_s3 + $0x20] sm:$0xff]   ;;  %v462_v10 = vld [vmem:[%s677_s3 + $0x30] sm:$0xff]   ;;  %v463_v11 = vld [vmem:[%s677_s3 + $0x38] sm:$0xff]  }
  0x17   :  { %429 = vmatprep.subr.bf16.mxu0 %v527_v0  ;;  %411 = vmatprep.subr.bf16.mxu1 %v527_v0  ;;  %v464_v12 = vld [vmem:[%s679_s5] sm:$0xff]   ;;  %v465_v29 = vld [vmem:[%s679_s5 + $0x8] sm:$0xff]   ;;  %v466_v30 = vld [vmem:[%s679_s5 + $0x10] sm:$0xff]  }
  0x18   :  { %v362_v13 = vld [vmem:[%s676_s2] ss:$0 sm:$0xff]  ;;  %v467_v31 = vld [vmem:[%s679_s5 + $0x18] sm:$0xff]   ;;  %v469_v33 = vld [vmem:[%s679_s5 + $0x28] sm:$0xff]  }
  0x19   :  { %406 = vmatmul.mubr.msk.bf16.vlgmr.msra.gmra.mrb[0].mxu0 %vm59_vm1, %v46_v3  ;;  %v468_v32 = vld [vmem:[%s679_s5 + $0x20] sm:$0xff]   ;;  %v470_v34 = vld [vmem:[%s679_s5 + $0x30] sm:$0xff]   ;;  %v471_v35 = vld [vmem:[%s679_s5 + $0x38] sm:$0xff]  }
  0x1a   :  { %445 = vmatprep.mubr.msk.bf16.mxu0 %vm528_vm0, %v527_v0  ;;  %412 = vmatpush3.bf16.msra.mxu1 %v457_v5  ;;  %v365_v36 = vld [vmem:[%s678_s4] ss:$0 sm:$0xff]  ;;  %s529_s4 = smov [#allocation5]  }
  0x1b   :  { %413 = vmatprep.subr.bf16.mxu1 %v527_v0  ;;  %430 = vmatpush3.bf16.msra.mxu0 %v464_v12  ;;  %v374_v52 = vld [vmem:[%s680_s6] ss:$0 sm:$0xff]  ;;  %s353_s25 = sshll.u32 %s529_s4, 4  ;;  %s354_s25 = int_to_ptr.vmem [resolvable:$true] %s353_s25 }
  0x1c   :  { %431 = vmatprep.subr.bf16.mxu0 %v527_v0  ;;  %s498_s26 = scalar_lea.vmem %s354_s25, 128  ;;  %p503_p9 = scmp.lt.s32.totalorder %s354_s25, %s354_s25 }
  0x1d   :  { %p499_p8 = scmp.ne.s32.totalorder %s354_s25, %s498_s26  ;;  %p504_p10 = scmp.lt.s32.totalorder %s498_s26, %s498_s26 }
  0x1e   :  { %414 = vmatpush3.bf16.msra.mxu1 %v458_v6 }
  0x1f   :  { %415 = vmatprep.subr.bf16.mxu1 %v527_v0  ;;  %432 = vmatpush3.bf16.msra.mxu0 %v465_v29  ;;  %p505_p11 = por %p504_p10, %p503_p9 }
  0x20   :  { %433 = vmatprep.subr.bf16.mxu0 %v527_v0 }
  0x21   :  { %p506_p12 = pnand %p505_p11, %p499_p8 }
  0x22   :  { %416 = vmatpush3.bf16.msra.mxu1 %v459_v7 }
  0x23   :  { %417 = vmatprep.subr.bf16.mxu1 %v527_v0  ;;  %434 = vmatpush3.bf16.msra.mxu0 %v466_v30 }
  0x24   :  { %435 = vmatprep.subr.bf16.mxu0 %v527_v0 }
  0x26   :  { %418 = vmatpush3.bf16.msra.mxu1 %v460_v8 }
  0x27   :  { %419 = vmatprep.subr.bf16.mxu1 %v527_v0  ;;  %436 = vmatpush3.bf16.msra.mxu0 %v467_v31 }
  0x28   :  { %437 = vmatprep.subr.bf16.mxu0 %v527_v0 }
  0x2a   :  { %420 = vmatpush3.bf16.msra.mxu1 %v461_v9 }
  0x2b   :  { %421 = vmatprep.subr.bf16.mxu1 %v527_v0  ;;  %438 = vmatpush3.bf16.msra.mxu0 %v468_v32 }
  0x2c   :  { %439 = vmatprep.subr.bf16.mxu0 %v527_v0 }
  0x2e   :  { %422 = vmatpush3.bf16.msra.mxu1 %v462_v10 }
  0x2f   :  { %423 = vmatprep.subr.bf16.mxu1 %v527_v0  ;;  %440 = vmatpush3.bf16.msra.mxu0 %v469_v33 }
  0x30   :  { %441 = vmatprep.subr.bf16.mxu0 %v527_v0 }
  0x32   :  { %424 = vmatpush3.bf16.msra.mxu1 %v463_v11 }
  0x33   :  { %442 = vmatpush3.bf16.msra.mxu0 %v470_v34 }
  0x34   :  { %443 = vmatprep.subr.bf16.mxu0 %v527_v0 }
  0x37   :  { %444 = vmatpush3.bf16.msra.mxu0 %v471_v35 }
  0xec   :  { %v97_v14 = vpop.f32.mrb[0].mxu0 }
  0xed   :  { %v98_v15 = vadd.f32 %v362_v13, %v97_v14  ;;  %v407_v16 = vpop.f32.mrb[1].mxu0 }
  0xee   :  { %v100_v17 = vpop.f32.mrb[2].mxu0 }
  0xef   :  { %v103_v18 = vmul.f32 %v98_v15, %v98_v15  ;;  %v408_v19 = vpop.f32.mrb[3].mxu0  ;;  %v105_v25 = vmul.f32 0.5, %v98_v15 }
  0xf1   :  { %v104_v20 = vmul.f32 %v103_v18, %v98_v15 }
  0xf3   :  { %v106_v21 = vmul.f32 0.044715, %v104_v20 }
  0xf5   :  { %v107_v22 = vadd.f32 %v106_v21, %v98_v15 }
  0xf7   :  { %v108_v23 = vmul.f32 0.7978846, %v107_v22 }
  0xf9   :  { %472 = vtanh.f32 %v108_v23 }
 0x103   :  { %v473_v24 = vpop.eup %472 }
 0x104   :  { %v110_v26 = vadd.f32 1.0, %v473_v24 }
 0x106   :  { %v111_v27 = vmul.f32 %v110_v26, %v105_v25 }
 0x108   :  { %v129_v28 = vpack.c.bf16 %v111_v27, %v111_v27 }
 0x10a   :  { %426 = vmatmul.mubr.bf16.vlgmr.msra.gmra.mrb[0].mxu1 %v129_v28 }
 0x1dd   :  { %v218_v37 = vpop.f32.mrb[0].mxu1 }
 0x1de   :  { %v219_v38 = vadd.f32 %v365_v36, %v218_v37  ;;  %v427_v39 = vpop.f32.mrb[1].mxu1 }
 0x1df   :  { %v221_v40 = vpop.f32.mrb[2].mxu1 }
 0x1e0   :  { %v224_v41 = vmul.f32 %v219_v38, %v219_v38  ;;  %v428_v42 = vpop.f32.mrb[3].mxu1  ;;  %v226_v48 = vmul.f32 0.5, %v219_v38 }
 0x1e2   :  { %v225_v43 = vmul.f32 %v224_v41, %v219_v38 }
 0x1e4   :  { %v227_v44 = vmul.f32 0.044715, %v225_v43 }
 0x1e6   :  { %v228_v45 = vadd.f32 %v227_v44, %v219_v38 }
 0x1e8   :  { %v229_v46 = vmul.f32 0.7978846, %v228_v45 }
 0x1ea   :  { %474 = vtanh.f32 %v229_v46 }
 0x1f4   :  { %v475_v47 = vpop.eup %474 }
 0x1f5   :  { %v231_v49 = vadd.f32 1.0, %v475_v47 }
 0x1f7   :  { %v232_v50 = vmul.f32 %v231_v49, %v226_v48 }
 0x1f9   :  { %v250_v51 = vpack.c.bf16 %v232_v50, %v232_v50 }
 0x1fb   :  { %446 = vmatmul.mubr.bf16.vlgmr.msra.gmra.mrb[4].mxu0 %v250_v51 }
 0x2ce   :  { %v339_v53 = vpop.f32.mrb[4].mxu0 }
 0x2cf   :  { %v340_v54 = vadd.f32 %v374_v52, %v339_v53  ;;  %v447_v55 = vpop.f32.mrb[5].mxu0 }
 0x2d0   :  { %v342_v56 = vpop.f32.mrb[6].mxu0 }
 0x2d1   :  { %v448_v57 = vpop.f32.mrb[7].mxu0  ;;  %346 = vst.msk [vmem:[#allocation5] sm:$0xff] %vm345_vm2, %v340_v54 }
 0x2d2   :  { %509 = shalt.err (!%p506_p12)
}
 0x2d3   :  { %s510_s6 = scalar_lea.hbm %s681_s7, 128 }
 0x2d4   :  { %p511_p13 = scmp.ne.s32.totalorder %s681_s7, %s510_s6  ;;  %p514_p0 = scmp.lt.u32.totalorder %s510_s6, %s681_s7 }
 0x2d6   :  { %p516_p1 = pnand %p514_p0, %p511_p13 }
 0x2d8   :  { %519 = shalt.err (!%p516_p1)
}
 0x2d9   :  { %356 = dma.vmem_to_hbm [thread:$0]  %s354_s25, 128, %s681_s7, [#allocation4]  }
 0x2da   :  { %522 = dma.done.wait [#allocation4], 128  }
 0x2db   :  { %523 = vsyncadd [#allocation4], 4294967168 }
 0x2dc   :  { %360 = vsyncpa [#allocation3], 1 }
 0x2dd   :  { %361 = vsyncpa [#allocation4], 1 }

</bundles_post_ra>
